<compile_context>
chip_gen: v7x
topology: tpu7x:2x2x1
jax: 0.10.0
libtpu: 0.0.40
codegen_flags: <defaults>
</compile_context>

<pallas_src>
import math
from functools import partial

import jax
import jax.numpy as jnp
from jax import lax
from jax.experimental import pallas as pl
from jax.experimental.pallas import tpu as pltpu


_MASK_VALUE = -1e30  # large finite negative: exp() underflows to 0, no -inf*0 NaNs


def _flash_attention_kernel(q_ref, k_ref, v_ref, o_ref,
                            m_scr, l_scr, acc_scr, *,
                            scale, mask_flag, block_q, block_k, kv_len, kv_padded):
    # q_ref: (block_q, E), k_ref: (block_k, E), v_ref: (block_k, D), o_ref: (block_q, D)
    qi = pl.program_id(2)
    ki = pl.program_id(3)
    nk = pl.num_programs(3)

    @pl.when(ki == 0)
    def _init():
        m_scr[...] = jnp.full(m_scr.shape, -jnp.inf, jnp.float32)
        l_scr[...] = jnp.zeros(l_scr.shape, jnp.float32)
        acc_scr[...] = jnp.zeros(acc_scr.shape, jnp.float32)

    q_start = qi * block_q
    k_start = ki * block_k

    def _update():
        # Fold the softmax scale into Q (tq x E multiply) and keep native dtype for MXU.
        q = q_ref[...] * scale
        k = k_ref[...]
        # scores[l, s] = sum_e q[l, e] * k[s, e]   (contract E on both, no transpose)
        s = lax.dot_general(q, k, (((1,), (1,)), ((), ())),
                            preferred_element_type=jnp.float32)       # (tq, tk) f32

        if mask_flag or kv_padded:
            cols = k_start + lax.broadcasted_iota(jnp.int32, (block_q, block_k), 1)
            mask = None
            if mask_flag:
                rows = q_start + lax.broadcasted_iota(jnp.int32, (block_q, block_k), 0)
                mask = cols > rows                      # strict upper triangle (causal)
            if kv_padded:
                pad = cols >= kv_len                    # out-of-range padded KV columns
                mask = pad if mask is None else (mask | pad)
            s = jnp.where(mask, _MASK_VALUE, s)

        # Online softmax update (all softmax math in f32).
        m_prev = m_scr[...]
        l_prev = l_scr[...]
        m_cur = jnp.max(s, axis=-1, keepdims=True)
        m_new = jnp.maximum(m_prev, m_cur)
        alpha = jnp.exp(m_prev - m_new)
        p = jnp.exp(s - m_new)
        l_scr[...] = alpha * l_prev + jnp.sum(p, axis=-1, keepdims=True)
        acc_scr[...] = alpha * acc_scr[...] + jnp.dot(
            p.astype(v_ref.dtype), v_ref[...], preferred_element_type=jnp.float32)
        m_scr[...] = m_new

    if mask_flag:
        # Skip KV blocks that lie entirely above the causal diagonal.
        @pl.when(k_start <= q_start + (block_q - 1))
        def _():
            _update()
    else:
        _update()

    @pl.when(ki == nk - 1)
    def _finalize():
        # 1/denominator applied once per Q block (folded into final scaling).
        inv_l = pl.reciprocal(l_scr[...], approx=False)
        o_ref[...] = (acc_scr[...] * inv_l).astype(o_ref.dtype)


def full_attention(queries, keys, values, attn_mask=None, *, mask_flag=True,
                   scale=None, output_attention=False, block_q=512, block_k=512):
    """Pallas flash-attention implementation of FullAttention.forward (eval mode)."""
    if attn_mask is not None:
        # TODO(synk): only the internally-built TriangularCausalMask is supported.
        raise NotImplementedError("custom attn_mask objects are not supported")
    if output_attention:
        # TODO(synk): the full (B,H,L,S) attention matrix is never materialized here.
        raise NotImplementedError("output_attention=True is not supported")

    B, L, H, E = queries.shape
    _, S, _, D = values.shape
    scale = float(scale) if scale is not None else 1.0 / math.sqrt(E)

    block_q = min(block_q, L)
    block_k = min(block_k, S)
    nq = pl.cdiv(L, block_q)
    nk = pl.cdiv(S, block_k)
    kv_padded = (nk * block_k) != S

    # Head-major layout for clean 2-D per-(b,h) tiles; allow_input_fusion lets XLA fuse
    # these transposes into the pallas_call input DMA (no extra HBM round-trip).
    q = jnp.transpose(queries, (0, 2, 1, 3))   # (B, H, L, E)
    k = jnp.transpose(keys, (0, 2, 1, 3))      # (B, H, S, E)
    v = jnp.transpose(values, (0, 2, 1, 3))    # (B, H, S, D)

    kernel = partial(_flash_attention_kernel, scale=scale, mask_flag=mask_flag,
                     block_q=block_q, block_k=block_k, kv_len=S, kv_padded=kv_padded)

    out = pl.pallas_call(
        kernel,
        out_shape=jax.ShapeDtypeStruct((B, H, L, D), queries.dtype),
        grid_spec=pltpu.PrefetchScalarGridSpec(
            num_scalar_prefetch=0,
            grid=(B, H, nq, nk),
            in_specs=[
                pl.BlockSpec((None, None, block_q, E), lambda b, h, i, j: (b, h, i, 0)),
                pl.BlockSpec((None, None, block_k, E), lambda b, h, i, j: (b, h, j, 0)),
                pl.BlockSpec((None, None, block_k, D), lambda b, h, i, j: (b, h, j, 0)),
            ],
            out_specs=pl.BlockSpec((None, None, block_q, D),
                                   lambda b, h, i, j: (b, h, i, 0)),
            scratch_shapes=[
                pltpu.VMEM((block_q, 1), jnp.float32),   # running max
                pltpu.VMEM((block_q, 1), jnp.float32),   # running sum
                pltpu.VMEM((block_q, D), jnp.float32),   # output accumulator
            ],
        ),
        compiler_params=pltpu.CompilerParams(
            dimension_semantics=("parallel", "parallel", "parallel", "arbitrary"),
            vmem_limit_bytes=32 * 1024 * 1024,
            allow_input_fusion=[True, True, True],
        ),
    )(q, k, v)

    V = jnp.transpose(out, (0, 2, 1, 3))   # (B, L, H, D)
    return V, None


def _reference(queries, keys, values, scale=None, mask_flag=True):
    B, L, H, E = queries.shape
    _, S, _, D = values.shape
    scale = scale if scale is not None else 1.0 / math.sqrt(E)
    scores = jnp.einsum('blhe,bshe->bhls', queries, keys)
    if mask_flag:
        mask = jnp.triu(jnp.ones((L, S), dtype=bool), k=1)
        scores = jnp.where(mask[None, None], -jnp.inf, scores)
    A = jax.nn.softmax(scale * scores, axis=-1)
    return jnp.einsum('bhls,bshd->blhd', A, values)


if __name__ == "__main__":
    # Config 1: small shapes consistent with the module (single-block path).
    B, L, S, H, E, D = 2, 8, 8, 4, 32, 32
    kq, kk, kv = jax.random.split(jax.random.PRNGKey(0), 3)
    queries = jax.random.normal(kq, (B, L, H, E), dtype=jnp.float32)
    keys_ = jax.random.normal(kk, (B, S, H, E), dtype=jnp.float32)
    values = jax.random.normal(kv, (B, S, H, D), dtype=jnp.float32)

    V, A = full_attention(queries, keys_, values, attn_mask=None)
    V = jax.block_until_ready(V)
    V_ref = _reference(queries, keys_, values)
    assert V.shape == (B, L, H, D)
    assert A is None
    assert jnp.allclose(V, V_ref, atol=1e-4, rtol=1e-4), \
        float(jnp.max(jnp.abs(V - V_ref)))

    # Config 2: still small, but exercises multi-block tiling, online softmax and
    # causal KV-block skipping (grid = (1, 2, 4, 4) with 16x16 blocks).
    B2, L2, S2, H2, E2, D2 = 1, 64, 64, 2, 32, 32
    k2q, k2k, k2v = jax.random.split(jax.random.PRNGKey(0), 3)
    q2 = jax.random.normal(k2q, (B2, L2, H2, E2), dtype=jnp.float32)
    k2 = jax.random.normal(k2k, (B2, S2, H2, E2), dtype=jnp.float32)
    v2 = jax.random.normal(k2v, (B2, S2, H2, D2), dtype=jnp.float32)
    V2, _ = full_attention(q2, k2, v2, attn_mask=None, block_q=16, block_k=16)
    V2 = jax.block_until_ready(V2)
    V2_ref = _reference(q2, k2, v2)
    assert jnp.allclose(V2, V2_ref, atol=1e-4, rtol=1e-4), \
        float(jnp.max(jnp.abs(V2 - V2_ref)))

    print("KERNEL_OK")
</pallas_src>

<mosaic_0001>
module attributes {stable_mosaic.version = 11 : i64} {
  func.func @_flash_attention_kernel(%arg0: i32, %arg1: i32, %arg2: i32, %arg3: i32, %arg4: memref<1x1x8x32xf32, #tpu.memory_space<vmem>>, %arg5: memref<1x1x8x32xf32, #tpu.memory_space<vmem>>, %arg6: memref<1x1x8x32xf32, #tpu.memory_space<vmem>>, %arg7: memref<1x1x8x32xf32, #tpu.memory_space<vmem>>, %arg8: memref<8x1xf32, #tpu.memory_space<vmem>>, %arg9: memref<8x1xf32, #tpu.memory_space<vmem>>, %arg10: memref<8x32xf32, #tpu.memory_space<vmem>>) attributes {dimension_semantics = [#tpu.dimension_semantics<parallel>, #tpu.dimension_semantics<parallel>, #tpu.dimension_semantics<parallel>, #tpu.dimension_semantics<arbitrary>], iteration_bounds = array<i64: 2, 4, 1, 1>, scalar_prefetch = 0 : i64, scratch_operands = 3 : i64, tpu.core_type = #tpu.core_type<tc>, window_params = [{transform_indices = @transform_0, window_bounds = array<i64: 1, 1, 8, 32>}, {transform_indices = @transform_1, window_bounds = array<i64: 1, 1, 8, 32>}, {transform_indices = @transform_2, window_bounds = array<i64: 1, 1, 8, 32>}, {transform_indices = @transform_3, window_bounds = array<i64: 1, 1, 8, 32>}]} {
    %c0_i32 = arith.constant 0 : i32
    %0 = arith.cmpi eq, %arg3, %c0_i32 : i32
    %1 = arith.extui %0 : i1 to i32
    %c0_i32_0 = arith.constant 0 : i32
    %2 = arith.cmpi ne, %1, %c0_i32_0 : i32
    scf.if %2 {
      %cst = arith.constant 0xFF800000 : f32
      %12 = vector.broadcast %cst : f32 to vector<8x1xf32>
      %c0 = arith.constant 0 : index
      %c0_5 = arith.constant 0 : index
      %13 = vector.load %arg8[%c0, %c0_5] : memref<8x1xf32, #tpu.memory_space<vmem>>, vector<8x1xf32>
      tpu.vector_store %arg8[%c0, %c0_5], %12 {strides = array<i32>} : memref<8x1xf32, #tpu.memory_space<vmem>>, vector<8x1xf32>,
      %cst_6 = arith.constant 0.000000e+00 : f32
      %14 = vector.broadcast %cst_6 : f32 to vector<8x1xf32>
      %c0_7 = arith.constant 0 : index
      %c0_8 = arith.constant 0 : index
      %15 = vector.load %arg9[%c0_7, %c0_8] : memref<8x1xf32, #tpu.memory_space<vmem>>, vector<8x1xf32>
      tpu.vector_store %arg9[%c0_7, %c0_8], %14 {strides = array<i32>} : memref<8x1xf32, #tpu.memory_space<vmem>>, vector<8x1xf32>,
      %cst_9 = arith.constant 0.000000e+00 : f32
      %16 = vector.broadcast %cst_9 : f32 to vector<8x32xf32>
      %c0_10 = arith.constant 0 : index
      %c0_11 = arith.constant 0 : index
      %17 = vector.load %arg10[%c0_10, %c0_11] : memref<8x32xf32, #tpu.memory_space<vmem>>, vector<8x32xf32>
      tpu.vector_store %arg10[%c0_10, %c0_11], %16 {strides = array<i32>} : memref<8x32xf32, #tpu.memory_space<vmem>>, vector<8x32xf32>,
    } else {
    }
    %c8_i32 = arith.constant 8 : i32
    %3 = arith.muli %arg2, %c8_i32 : i32
    %c8_i32_1 = arith.constant 8 : i32
    %4 = arith.muli %arg3, %c8_i32_1 : i32
    %c7_i32 = arith.constant 7 : i32
    %5 = arith.addi %3, %c7_i32 : i32
    %6 = arith.cmpi sle, %4, %5 : i32
    %7 = arith.extui %6 : i1 to i32
    %c0_i32_2 = arith.constant 0 : i32
    %8 = arith.cmpi ne, %7, %c0_i32_2 : i32
    scf.if %8 {
      %c0 = arith.constant 0 : index
      %c0_5 = arith.constant 0 : index
      %c0_6 = arith.constant 0 : index
      %c0_7 = arith.constant 0 : index
      %12 = vector.load %arg4[%c0, %c0_5, %c0_6, %c0_7] : memref<1x1x8x32xf32, #tpu.memory_space<vmem>>, vector<1x1x8x32xf32>
      %13 = vector.shape_cast %12 : vector<1x1x8x32xf32> to vector<8x32xf32>
      %cst = arith.constant 0.176776692 : f32
      %14 = vector.broadcast %cst : f32 to vector<8x32xf32>
      %15 = arith.mulf %13, %14 : vector<8x32xf32>
      %c0_8 = arith.constant 0 : index
      %c0_9 = arith.constant 0 : index
      %c0_10 = arith.constant 0 : index
      %c0_11 = arith.constant 0 : index
      %16 = vector.load %arg5[%c0_8, %c0_9, %c0_10, %c0_11] : memref<1x1x8x32xf32, #tpu.memory_space<vmem>>, vector<1x1x8x32xf32>
      %17 = vector.shape_cast %16 : vector<1x1x8x32xf32> to vector<8x32xf32>
      %cst_12 = arith.constant dense<0.000000e+00> : vector<8x8xf32>
      %18 = tpu.matmul %15, %17, %cst_12 {dimension_numbers = #tpu.dot_dimension_numbers<[1], [1], [0], [0], [0, 0, 1, 0], [], []>} : vector<8x32xf32>, vector<8x32xf32>, vector<8x8xf32> -> vector<8x8xf32>
      %19 = tpu.iota {dimensions = array<i32: 1>} : vector<8x8xi32>
      %20 = vector.broadcast %4 : i32 to vector<8x8xi32>
      %21 = arith.addi %20, %19 : vector<8x8xi32>
      %22 = tpu.iota {dimensions = array<i32: 0>} : vector<8x8xi32>
      %23 = vector.broadcast %3 : i32 to vector<8x8xi32>
      %24 = arith.addi %23, %22 : vector<8x8xi32>
      %25 = arith.cmpi sgt, %21, %24 : vector<8x8xi32>
      %cst_13 = arith.constant -1.000000e+30 : f32
      %26 = vector.broadcast %cst_13 : f32 to vector<8x8xf32>
      %27 = arith.select %25, %26, %18 : vector<8x8xi1>, vector<8x8xf32>
      %c0_14 = arith.constant 0 : index
      %c0_15 = arith.constant 0 : index
      %28 = vector.load %arg8[%c0_14, %c0_15] : memref<8x1xf32, #tpu.memory_space<vmem>>, vector<8x1xf32>
      %c0_16 = arith.constant 0 : index
      %c0_17 = arith.constant 0 : index
      %29 = vector.load %arg9[%c0_16, %c0_17] : memref<8x1xf32, #tpu.memory_space<vmem>>, vector<8x1xf32>
      %cst_18 = arith.constant dense<0xFF800000> : vector<8xf32>
      %30 = vector.multi_reduction <maximumf>, %27, %cst_18 [1] : vector<8x8xf32> to vector<8xf32>
      %31 = vector.shape_cast %30 : vector<8xf32> to vector<8x1xf32>
      %32 = arith.maximumf %28, %31 : vector<8x1xf32>
      %33 = arith.subf %28, %32 : vector<8x1xf32>
      %34 = math.exp %33 : vector<8x1xf32>
      %35 = vector.broadcast %32 : vector<8x1xf32> to vector<8x8xf32>
      %36 = arith.subf %27, %35 : vector<8x8xf32>
      %37 = math.exp %36 : vector<8x8xf32>
      %38 = arith.mulf %34, %29 : vector<8x1xf32>
      %cst_19 = arith.constant dense<0.000000e+00> : vector<8xf32>
      %39 = vector.multi_reduction <add>, %37, %cst_19 [1] : vector<8x8xf32> to vector<8xf32>
      %40 = vector.shape_cast %39 : vector<8xf32> to vector<8x1xf32>
      %41 = arith.addf %38, %40 : vector<8x1xf32>
      %c0_20 = arith.constant 0 : index
      %c0_21 = arith.constant 0 : index
      %42 = vector.load %arg9[%c0_20, %c0_21] : memref<8x1xf32, #tpu.memory_space<vmem>>, vector<8x1xf32>
      tpu.vector_store %arg9[%c0_20, %c0_21], %41 {strides = array<i32>} : memref<8x1xf32, #tpu.memory_space<vmem>>, vector<8x1xf32>,
      %c0_22 = arith.constant 0 : index
      %c0_23 = arith.constant 0 : index
      %43 = vector.load %arg10[%c0_22, %c0_23] : memref<8x32xf32, #tpu.memory_space<vmem>>, vector<8x32xf32>
      %44 = vector.broadcast %34 : vector<8x1xf32> to vector<8x32xf32>
      %45 = arith.mulf %44, %43 : vector<8x32xf32>
      %c0_24 = arith.constant 0 : index
      %c0_25 = arith.constant 0 : index
      %c0_26 = arith.constant 0 : index
      %c0_27 = arith.constant 0 : index
      %46 = vector.load %arg6[%c0_24, %c0_25, %c0_26, %c0_27] : memref<1x1x8x32xf32, #tpu.memory_space<vmem>>, vector<1x1x8x32xf32>
      %47 = vector.shape_cast %46 : vector<1x1x8x32xf32> to vector<8x32xf32>
      %cst_28 = arith.constant dense<0.000000e+00> : vector<8x32xf32>
      %48 = tpu.matmul %37, %47, %cst_28 {dimension_numbers = #tpu.dot_dimension_numbers<[1], [0], [0], [1], [0, 0, 1, 1], [], []>} : vector<8x8xf32>, vector<8x32xf32>, vector<8x32xf32> -> vector<8x32xf32>
      %49 = arith.addf %45, %48 : vector<8x32xf32>
      %c0_29 = arith.constant 0 : index
      %c0_30 = arith.constant 0 : index
      %50 = vector.load %arg10[%c0_29, %c0_30] : memref<8x32xf32, #tpu.memory_space<vmem>>, vector<8x32xf32>
      tpu.vector_store %arg10[%c0_29, %c0_30], %49 {strides = array<i32>} : memref<8x32xf32, #tpu.memory_space<vmem>>, vector<8x32xf32>,
      %c0_31 = arith.constant 0 : index
      %c0_32 = arith.constant 0 : index
      %51 = vector.load %arg8[%c0_31, %c0_32] : memref<8x1xf32, #tpu.memory_space<vmem>>, vector<8x1xf32>
      tpu.vector_store %arg8[%c0_31, %c0_32], %32 {strides = array<i32>} : memref<8x1xf32, #tpu.memory_space<vmem>>, vector<8x1xf32>,
    } else {
    }
    %c0_i32_3 = arith.constant 0 : i32
    %9 = arith.cmpi eq, %arg3, %c0_i32_3 : i32
    %10 = arith.extui %9 : i1 to i32
    %c0_i32_4 = arith.constant 0 : i32
    %11 = arith.cmpi ne, %10, %c0_i32_4 : i32
    scf.if %11 {
      %c0 = arith.constant 0 : index
      %c0_5 = arith.constant 0 : index
      %12 = vector.load %arg9[%c0, %c0_5] : memref<8x1xf32, #tpu.memory_space<vmem>>, vector<8x1xf32>
      %13 = tpu.reciprocal %12 : vector<8x1xf32> -> vector<8x1xf32>
      %c0_6 = arith.constant 0 : index
      %c0_7 = arith.constant 0 : index
      %14 = vector.load %arg10[%c0_6, %c0_7] : memref<8x32xf32, #tpu.memory_space<vmem>>, vector<8x32xf32>
      %15 = vector.broadcast %13 : vector<8x1xf32> to vector<8x32xf32>
      %16 = arith.mulf %14, %15 : vector<8x32xf32>
      %c0_8 = arith.constant 0 : index
      %c0_9 = arith.constant 0 : index
      %c0_10 = arith.constant 0 : index
      %c0_11 = arith.constant 0 : index
      %17 = vector.load %arg7[%c0_8, %c0_9, %c0_10, %c0_11] : memref<1x1x8x32xf32, #tpu.memory_space<vmem>>, vector<1x1x8x32xf32>
      %18 = vector.shape_cast %17 : vector<1x1x8x32xf32> to vector<8x32xf32>
      %19 = vector.shape_cast %16 : vector<8x32xf32> to vector<1x1x8x32xf32>
      tpu.vector_store %arg7[%c0_8, %c0_9, %c0_10, %c0_11], %19 {strides = array<i32>} : memref<1x1x8x32xf32, #tpu.memory_space<vmem>>, vector<1x1x8x32xf32>,
    } else {
    }
    return
  }
  func.func @transform_0(%arg0: i32, %arg1: i32, %arg2: i32, %arg3: i32) -> (i32, i32, i32, i32) {
    %c0_i32 = arith.constant 0 : i32
    %c0_i32_0 = arith.constant 0 : i32
    return %arg0, %arg1, %arg2, %c0_i32 : i32, i32, i32, i32
  }
  func.func @transform_1(%arg0: i32, %arg1: i32, %arg2: i32, %arg3: i32) -> (i32, i32, i32, i32) {
    %c0_i32 = arith.constant 0 : i32
    %c0_i32_0 = arith.constant 0 : i32
    return %arg0, %arg1, %arg3, %c0_i32 : i32, i32, i32, i32
  }
  func.func @transform_2(%arg0: i32, %arg1: i32, %arg2: i32, %arg3: i32) -> (i32, i32, i32, i32) {
    %c0_i32 = arith.constant 0 : i32
    %c0_i32_0 = arith.constant 0 : i32
    return %arg0, %arg1, %arg3, %c0_i32 : i32, i32, i32, i32
  }
  func.func @transform_3(%arg0: i32, %arg1: i32, %arg2: i32, %arg3: i32) -> (i32, i32, i32, i32) {
    %c0_i32 = arith.constant 0 : i32
    %c0_i32_0 = arith.constant 0 : i32
    return %arg0, %arg1, %arg2, %c0_i32 : i32, i32, i32, i32
  }
}

</mosaic_0001>

<bundles_post_ra>
// kernel: tpu_custom_call.1
= control target key start
LH: loop header
LB: loop body
LE: loop exit
PB: predicated region body
PF: predicated region fallthrough
CT: control target
= control target key end

     0   :  { %s1356_s0 = inlined_call_operand.hbm [shape: f32[2,4,8,32], index: 0, kind: input, shape index: {}]   ;;  %s1357_s1 = inlined_call_operand.hbm [shape: f32[2,4,8,32], index: 1, kind: input, shape index: {}]   ;;  %s1358_s2 = inlined_call_operand.hbm [shape: f32[2,4,8,32], index: 2, kind: input, shape index: {}]   ;;  %s1359_s3 = inlined_call_operand.hbm [shape: f32[2,4,8,32], index: 3, kind: output, shape index: {}]  }
   0x1   :  { %1369 = sst [smem:[#allocation21_spill]] %s1357_s1 }
   0x2   :  { %8 = vsyncpa [#allocation6], 0 }
   0x3   :  { %10 = vsyncpa [#allocation6 + $0x1], 0 }
   0x4   :  { %11 = vsyncpa [#allocation9], 0 }
   0x5   :  { %13 = vsyncpa [#allocation9 + $0x1], 0 }
   0x6   :  { %14 = vsyncpa [#allocation7], 0 }
   0x7   :  { %16 = vsyncpa [#allocation7 + $0x1], 0  ;;  %s1058_s12 = smov 0   ;;  %s1060_s13 = smov 0  }
   0x8   :  { %s1062_s14 = smov 0   ;;  %s1064_s15 = smov 0  }
   0x9   :  { %s1066_s16 = smov 0   ;;  %s1068_s17 = smov 0  }
   0xa   :  { %s1070_s18 = smov 0   ;;  %s1072_s19 = smov 0  }
   0xb LB: > { %1370 = sst [smem:[#allocation15_spill]] %s1020_s17  ;;  %s1099_s20 = sadd.s32 4294967295, %s1028_s19   ;;  %s1028_s19 = sphi %s1072_s19, %s22_s19   ;;  %s1024_s18 = sphi %s1070_s18, %s1397_s18   ;;  %s1020_s17 = sphi %s1068_s17, %s1396_s17   ;;  %s1016_s16 = sphi %s1066_s16, %s1395_s16   ;;  %s1012_s15 = sphi %s1064_s15, %s1394_s15   ;;  %s1008_s14 = sphi %s1062_s14, %s1400_s14   ;;  %s1004_s13 = sphi %s1060_s13, %s1399_s13   ;;  %s1000_s12 = sphi %s1058_s12, %s1398_s12  }
   0xc   : > { %1371 = sst [smem:[#allocation16_spill]] %s1024_s18  ;;  %s697_s21 = sadd.s32 4294967294, %s1028_s19  }
   0xd   : > { %s44_s22 = sadd.s32 1, %s1020_s17  ;;  %s48_s23 = sadd.s32 1, %s1024_s18 }
   0xe   : > { %p46_p0 = scmp.ge.s32.totalorder %s44_s22, 4  ;;  %s59_s24 = sadd.s32 1, %s1008_s14 }
   0xf   : > { %p66_p1 = scmp.ne.s32.totalorder %s1008_s14, %s1004_s13  ;;  %p67_p2 = scmp.eq.s32.totalorder %s1028_s19, 0 }
  0x10   : > { %s1402_s22 = smov (%p46_p0, %s44_s22), 0  ;;  %s1404_s23 = smov (!%p46_p0, %s48_s23), %s1024_s18 }
  0x11   : > { %1372 = sst [smem:[#allocation17_spill]] %s1402_s22  ;;  %s53_s25 = ssub.s32 %s1020_s17, %s1402_s22 }
  0x12   : > { %p1113_p3 = por %p67_p2, %p66_p1  ;;  %p50_p4 = scmp.ge.s32.totalorder %s1404_s23, 2 }
  0x13   : > { %p72_p5 = scmp.ne.s32.totalorder %s1004_s13, %s1000_s12  ;;  %p73_p6 = scmp.eq.s32.totalorder %s1099_s20, 0 }
  0x14   : > { %p160_p7 = scmp.eq.s32.totalorder %s1099_s20, 7  ;;  %s1406_s23 = smov (%p50_p4, %s1404_s23), 0 }
  0x15   : > { %1374 = sst [smem:[#allocation18_spill]] %s1406_s23  ;;  %p1123_p8 = por %p73_p6, %p72_p5 }
  0x16   : > { %p1127_p9 = por %p160_p7, %p66_p1  ;;  %s52_s29 = ssub.s32 %s1024_s18, %s1406_s23 }
  0x17   : > { %s1375_s27 = scalar_select %p1123_p8, 1, 0 }
  0x18   : > { %s1376_s28 = scalar_select %p1127_p9, 1, 0 }
  0x19   : > { %p166_p10 = scmp.eq.s32.totalorder %s697_s21, 7  ;;  %s54_s30 = sor.u32 %s53_s25, %s52_s29 }
  0x1a   : > { %p57_p11 = scmp.eq.s32.totalorder %s54_s30, 0  ;;  %p758_p13 = scmp.lt.s32.totalorder %s1028_s19, 8 }
  0x1b   : > { %p1133_p12 = por %p166_p10, %p72_p5  ;;  %s1360_s5 = sand.u32 1, %s1008_s14  }
  0x1c   : > { %s1140_s6 = scalar_select %p57_p11, %s1008_s14, %s59_s24  }
  0x1d   : > { %s1377_s4 = scalar_select %p1133_p12, 1, 0 }
  0x1e   : > { %1379 = sst [smem:[#allocation20_spill]] %s1140_s6  ;;  %s1144_s7 = sshll.u32 %s1360_s5, 3 }
  0x1f   : > { %1378 = sst [smem:[#allocation19_spill]] %s1377_s4  ;;  %s701_s8 = sshll.u32 %s1024_s18, 2 }
  0x20   : > { %s196_s9 = sadd.s32 %s1020_s17, %s701_s8  ;;  %p1150_p0 = pnand %p758_p13, %p1113_p3 }
  0x21   : > { %s1154_s11 = sshll.u32 %s196_s9, 7  ;;  %s207_s21 = sand.u32 1, %s1028_s19  }
  0x22   : > { %s1380_s10 = scalar_select %p1150_p0, 1, 0 }
  0x23   : > { %s1381_s1 = sld [smem:[#allocation21_spill]]  ;;  %s211_s30 = scalar_lea.vmem [#allocation8], %s1144_s7 }
  0x24   : > { %s221_s26 = sshll.u32 %s211_s30, 4  ;;  %s1168_s8 = scalar_lea.sflag [#allocation9], %s207_s21  ;;  %s1165_s26 = int_to_ptr.vmem [resolvable:$true] %s221_s26 }
  0x25   : > { %p1174_p4 = pneg %p1150_p0 }
  0x29   : > { %s1161_s24 = scalar_lea.hbm %s1381_s1, %s1154_s11  ;;  %s841_s30 = scalar_lea.hbm %s1381_s1, 1024 }
  0x2a   : > { %s836_s9 = scalar_lea.hbm %s1161_s24, 128  ;;  %p842_p7 = scmp.lt.u32.totalorder %s1161_s24, %s1381_s1 }
  0x2b   : > { %p837_p3 = scmp.ne.s32.totalorder %s1161_s24, %s836_s9  ;;  %p843_p10 = scmp.lt.u32.totalorder %s841_s30, %s836_s9 }
  0x2c   : > { %p845_p13 = scmp.lt.u32.totalorder %s836_s9, %s1161_s24 }
  0x2d   : > { %p839_p5 = pnand %p1174_p4, %p837_p3  ;;  %p844_p11 = por %p843_p10, %p842_p7 }
  0x2f   : > { %p840_p6 = pneg %p839_p5  ;;  %p846_p1 = por %p845_p13, %p844_p11 }
  0x31   : > { %p847_p2 = pnand %p846_p1, %p840_p6 }
  0x33   : > { %850 = shalt.err (!%p847_p2)
}
  0x34   : > { %s851_s21 = scalar_lea.vmem %s1165_s26, 128  ;;  %s1030_s25 = smov [#allocation8]  }
  0x35   : > { %p852_p3 = scmp.ne.s32.totalorder %s1165_s26, %s851_s21  ;;  %s856_s29 = sshll.u32 %s1030_s25, 4  ;;  %s857_s29 = int_to_ptr.vmem [resolvable:$false] %s856_s29 }
  0x36   : > { %s858_s22 = scalar_lea.vmem %s857_s29, 256  ;;  %p859_p9 = scmp.lt.s32.totalorder %s1165_s26, %s857_s29 }
  0x37   : > { %p854_p5 = pnand %p852_p3, %p1174_p4  ;;  %p860_p8 = scmp.lt.s32.totalorder %s858_s22, %s851_s21 }
  0x39   : > { %p855_p12 = pneg %p854_p5  ;;  %p861_p7 = por %p860_p8, %p859_p9 }
  0x3b   : > { %p862_p10 = pnand %p861_p7, %p855_p12 }
  0x3d   : > { %865 = shalt.err (!%p862_p10)
}
  0x3e   : > { %750 = dma.hbm_to_vmem [thread:$0]  (!%p1150_p0), %s1161_s24, 128, %s1165_s26, %s1168_s8  }
  0x3f   : > { %p1383_p1 = scmp.lt.s32.totalorder %s1028_s19, 9  ;;  %p1384_p2 = scmp.ge.s32.totalorder %s1028_s19, 1 }
  0x40   : > { %s1210_s21 = scalar_lea.hbm %s1356_s0, %s1154_s11  ;;  %s190_s25 = scalar_lea.vmem [#allocation5], %s1144_s7 }
  0x41   : > { %p1202_p6 = pnand %p1384_p2, %p1383_p1  ;;  %s200_s29 = sshll.u32 %s190_s25, 4  ;;  %s1213_s29 = int_to_ptr.vmem [resolvable:$true] %s200_s29 }
  0x42   : > { %s1219_s22 = scalar_lea.hbm %s1358_s2, %s1154_s11  ;;  %s1386_s1 = sand.u32 1, %s1008_s14  }
  0x43   : > { %s1385_s23 = scalar_select %p1202_p6, 1, 0 }
  0x44   : > { %s187_s18 = scalar_lea.sflag [#allocation6], %s1386_s1  ;;  %s866_s17 = scalar_lea.hbm %s1210_s21, 128 }
  0x45   : > { %p867_p8 = scmp.ne.s32.totalorder %s1210_s21, %s866_s17  ;;  %s871_s6 = scalar_lea.hbm %s1356_s0, 1024 }
  0x46   : > { %p872_p11 = scmp.lt.u32.totalorder %s1210_s21, %s1356_s0  ;;  %p873_p13 = scmp.lt.u32.totalorder %s871_s6, %s866_s17 }
  0x47   : > { %p869_p9 = pnand %p867_p8, %p1174_p4  ;;  %p875_p5 = scmp.lt.u32.totalorder %s866_s17, %s1210_s21 }
  0x48   : > { %p874_p3 = por %p873_p13, %p872_p11 }
  0x49   : > { %p870_p12 = pneg %p869_p9 }
  0x4a   : > { %p876_p7 = por %p875_p5, %p874_p3 }
  0x4c   : > { %p877_p10 = pnand %p876_p7, %p870_p12 }
  0x4e   : > { %880 = shalt.err (!%p877_p10)
}
  0x4f   : > { %s881_s1 = scalar_lea.vmem %s1213_s29, 128  ;;  %s1031_s11 = smov [#allocation5]  }
  0x50   : > { %p882_p1 = scmp.ne.s32.totalorder %s1213_s29, %s881_s1  ;;  %s886_s24 = sshll.u32 %s1031_s11, 4  ;;  %s887_s24 = int_to_ptr.vmem [resolvable:$false] %s886_s24 }
  0x51   : > { %s888_s4 = scalar_lea.vmem %s887_s24, 256  ;;  %p889_p9 = scmp.lt.s32.totalorder %s1213_s29, %s887_s24 }
  0x52   : > { %p884_p2 = pnand %p882_p1, %p1174_p4  ;;  %p890_p6 = scmp.lt.s32.totalorder %s888_s4, %s881_s1 }
  0x54   : > { %p885_p8 = pneg %p884_p2  ;;  %p891_p11 = por %p890_p6, %p889_p9 }
  0x56   : > { %p892_p13 = pnand %p891_p11, %p885_p8 }
  0x58   : > { %895 = shalt.err (!%p892_p13)
}
  0x59   : > { %747 = dma.hbm_to_vmem [thread:$0]  (!%p1150_p0), %s1210_s21, 128, %s1213_s29, %s187_s18  }
  0x5a   : > { %s232_s17 = scalar_lea.vmem [#allocation10], %s1144_s7  ;;  %s896_s26 = scalar_lea.hbm %s1219_s22, 128 }
  0x5b   : > { %s242_s6 = sshll.u32 %s232_s17, 4  ;;  %p897_p12 = scmp.ne.s32.totalorder %s1219_s22, %s896_s26  ;;  %s243_s6 = int_to_ptr.vmem [resolvable:$true] %s242_s6 }
  0x5c   : > { %s901_s25 = scalar_lea.hbm %s1358_s2, 1024  ;;  %p902_p5 = scmp.lt.u32.totalorder %s1219_s22, %s1358_s2 }
  0x5d   : > { %p899_p6 = pnand %p897_p12, %p1174_p4  ;;  %p903_p7 = scmp.lt.u32.totalorder %s901_s25, %s896_s26 }
  0x5e   : > { %p905_p1 = scmp.lt.u32.totalorder %s896_s26, %s1219_s22 }
  0x5f   : > { %p900_p3 = pneg %p899_p6  ;;  %p904_p10 = por %p903_p7, %p902_p5 }
  0x61   : > { %p906_p2 = por %p905_p1, %p904_p10 }
  0x63   : > { %p907_p8 = pnand %p906_p2, %p900_p3 }
  0x65   : > { %910 = shalt.err (!%p907_p8)
}
  0x66   : > { %s911_s18 = scalar_lea.vmem %s243_s6, 128  ;;  %s1032_s7 = smov [#allocation10]  }
  0x67   : > { %p912_p9 = scmp.ne.s32.totalorder %s243_s6, %s911_s18  ;;  %s916_s21 = sshll.u32 %s1032_s7, 4  ;;  %s917_s21 = int_to_ptr.vmem [resolvable:$false] %s916_s21 }
  0x68   : > { %s918_s29 = scalar_lea.vmem %s917_s21, 256  ;;  %p919_p12 = scmp.lt.s32.totalorder %s243_s6, %s917_s21 }
  0x69   : > { %p914_p11 = pnand %p912_p9, %p1174_p4  ;;  %p920_p6 = scmp.lt.s32.totalorder %s918_s29, %s911_s18 }
  0x6b   : > { %p915_p13 = pneg %p914_p11  ;;  %p921_p0 = por %p920_p6, %p919_p12 }
  0x6d   : > { %p922_p5 = pnand %p921_p0, %p915_p13 }
  0x6f   : > { %925 = shalt.err (!%p922_p5)
}
  0x70   : > { %p1387_p7 = scmp.ne.s32.totalorder %s1380_s10, 0  ;;  %p1388_p3 = scmp.ne.s32.totalorder %s1385_s23, 0 }
  0x71   : > { %s1266_s5 = sand.u32 (!%p1388_p3), 1, %s1004_s13   ;;  %p1389_p0 = scmp.ne.s32.totalorder (!%p1388_p3), %s1375_s27, 0 }
  0x72   : > { %753 = dma.hbm_to_vmem [thread:$0]  (!%p1387_p7), %s1219_s22, 128, %s243_s6, %s1168_s8  }
  0x73   : > { %251 = sbr.rel (%p1388_p3) target bundleno = 941 (0x3ad), region = 32  ;;  %s1269_s24 = sshll.u32 (!%p1388_p3), %s1266_s5, 3 }
  0x74   : > { %s254_s4 = scalar_lea.sflag (!%p1388_p3), [#allocation6], %s1266_s5  ;;  %s257_s17 = scalar_lea.vmem (!%p1388_p3), [#allocation5], %s1269_s24 }
  0x7a   : > { %987 = dma.done.wait (%p1389_p0), %s254_s4, 128  }
  0x7b   : > { %989 = vsyncadd (%p1389_p0), %s254_s4, 4294967168  ;;  %s262_s10 = sand.u32 1, %s1099_s20   ;;  %s266_s23 = scalar_lea.vmem [#allocation8], %s1269_s24 }
  0x7c   : > { %s263_s8 = scalar_lea.sflag [#allocation9], %s262_s10 }
  0x7d   : > { %991 = dma.done.wait (%p1389_p0), %s263_s8, 256  }
  0x7e   : > { %993 = vsyncadd (%p1389_p0), %s263_s8, 4294967040  ;;  %vm315_vm0 = vcmask 261120   ;;  %v1033_v0 = vmov 0.0   ;;  %vm1034_vm1 = vmmov 0   ;;  %v326_v1 = vld [vmem:[%s266_s23] sm:$0xff]  ;;  %v324_v2 = vld [vmem:[%s257_s17] sm:$0xff]  ;;  %v404_v5 = vlaneseq }
  0x7f   : > { %726 = vmatprep.subr.mxu0 %v1033_v0  ;;  %316 = vst.msk [vmem:[#allocation4] sm:$0xff] %vm315_vm0, %v1033_v0  ;;  %728 = vmatprep.mubr.msk.f32.mxu0 %vm1034_vm1, %v1033_v0  ;;  %v325_v3 = vmul.f32 0.17677669, %v324_v2  ;;  %vm312_vm2 = vcmask 7168   ;;  %v1035_v4 = vmov -inf   ;;  %vm416_vm4 = vcmask 64512  }
  0x80   : > { %731 = vmatprep.subr.mxu1 %v1033_v0  ;;  %733 = vmatprep.mubr.msk.f32.mxu1 %vm1034_vm1, %v1033_v0  ;;  %313 = vst.msk [vmem:[#allocation2] sm:$0xff] %vm312_vm2, %v1035_v4  ;;  %314 = vst.msk [vmem:[#allocation3] sm:$0xff] %vm312_vm2, %v1033_v0  ;;  %v405_v6 = vand.u32 127, %v404_v5  ;;  %v409_v7 = vshrl.u32 %v404_v5, 7  ;;  %v1036_v12 = vmov 0   ;;  %s275_s20 = scalar_lea.vmem [#allocation10], %s1269_s24 }
  0x81   : > { %727 = vmatpush3.xpose.msk.msra.mxu0 %vm315_vm0, %v326_v1  ;;  %828 = vset.pattern.permute.xlu0 %v1036_v12  ;;  %v446_v17 = vld [vmem:[%s275_s20] sm:$0xff]  ;;  %s718_s27 = sshll.u32 %s1016_s16, 2  ;;  %s307_s26 = scalar_lea.vmem [#allocation11], %s1269_s24 }
  0x82   : > { %vm412_vm3 = vcmp.gt.s32.totalorder %v405_v6, %v409_v7  ;;  %829 = vset.pattern.permute.xlu1 %v1036_v12  ;;  %732 = vmatpush3.msra.mxu1 %v446_v17  ;;  %s550_s22 = sadd.s32 %s1012_s15, %s718_s27  ;;  %s554_s9 = sshll.u32 %s307_s26, 4  ;;  %s1303_s9 = int_to_ptr.vmem [resolvable:$true] %s554_s9 }
  0x83   : > { %s719_s6 = sshll.u32 %s550_s22, 7  ;;  %s538_s16 = scalar_lea.sflag [#allocation7], %s1266_s5 }
  0x84   : > { %729 = vmatmul.mubr.msk.f32.vlgmr.msra.gmra.mrb[0].mxu0 %vm315_vm0, %v325_v3  ;;  %s1301_s1 = scalar_lea.hbm %s1359_s3, %s719_s6  ;;  %s926_s15 = scalar_lea.vmem %s1303_s9, 128 }
  0x85   : > { %p927_p4 = scmp.ne.s32.totalorder %s1303_s9, %s926_s15  ;;  %p1390_p10 = scmp.ne.s32.totalorder %s1376_s28, 0 }
  0x86   : > { %v439_v31 = vld [vmem:[#allocation4] sm:$0xff]  ;;  %s1037_s11 = smov [#allocation11]  }
  0x87   : > { %v414_v13 = vld [vmem:[#allocation2] sm:$0xff]  ;;  %v415_v25 = vld [vmem:[#allocation3] sm:$0xff]  ;;  %p928_p1 = pnand %p927_p4, %p1390_p10  ;;  %s930_s18 = sshll.u32 %s1037_s11, 4  ;;  %s931_s18 = int_to_ptr.vmem [resolvable:$false] %s930_s18 }
  0x88   : > { %s932_s7 = scalar_lea.vmem %s931_s18, 256  ;;  %p933_p8 = scmp.lt.s32.totalorder %s1303_s9, %s931_s18 }
  0x89   : > { %p929_p2 = pneg %p928_p1  ;;  %p934_p9 = scmp.lt.s32.totalorder %s932_s7, %s926_s15 }
  0x8b   : > { %p935_p11 = por %p934_p9, %p933_p8 }
  0x8d   : > { %p936_p13 = pnand %p935_p11, %p929_p2 }
 0x157   : > { %v400_v8 = vpop.f32.mrb[0].mxu0 }
 0x158   : > { %v413_v9 = vsel %vm412_vm3, -1e+30, %v400_v8  ;;  %v730_v10 = vpop.f32.mrb[1].mxu0 }
 0x159   : > { %v417_v11 = vsel %vm416_vm4, %v413_v9, -inf }
 0x15a   : > { %418 = vmax.xlane.f32.xlu0 %v417_v11 }
 0x1e7   : > { %v419_v14 = vpop.xlane.xlu0 %418 }
 0x1e8   : > { %v420_v15 = vmax.f32 %v414_v13, %v419_v14 }
 0x1ea   : > { %v421_v16 = vsub.f32 %v414_v13, %v420_v15  ;;  %522 = vst.msk [vmem:[#allocation2] sm:$0xff] %vm312_vm2, %v420_v15  ;;  %426 = vperm.xlu0 %828, %v420_v15  }
 0x1ec   : > { %v422_v23 = vmul.f32 1.442695, %v421_v16 }
 0x269   : > { %v427_v18 = vpop.permute.xlu0 %426 }
 0x26a   : > { %v429_v19 = vsub.f32 %v413_v9, %v427_v18 }
 0x26c   : > { %v430_v20 = vmul.f32 1.442695, %v429_v19 }
 0x26e   : > { %830 = vpow2.f32 %v430_v20 }
 0x26f   : > { %832 = vpow2.f32 %v422_v23 }
 0x278   : > { %v831_v21 = vpop.eup %830 }
 0x279   : > { %734 = vmatmul.mubr.msk.f32.vlgmr.msra.gmra.mrb[0].mxu1 %vm416_vm4, %v831_v21  ;;  %v433_v22 = vsel %vm416_vm4, %v831_v21, 0.0  ;;  %v833_v24 = vpop.eup %832 }
 0x27a   : > { %434 = vadd.xlane.f32.xlu1 %v433_v22  ;;  %v432_v26 = vmul.f32 %v833_v24, %v415_v25 }
 0x28b   : > { %442 = vperm.xlu1 %829, %v833_v24  }
 0x307   : > { %v435_v27 = vpop.xlane.xlu1 %434 }
 0x308   : > { %v436_v28 = vadd.f32 %v435_v27, %v432_v26 }
 0x30a   : > { %438 = vst.msk [vmem:[#allocation3] sm:$0xff] %vm312_vm2, %v436_v28 }
 0x30b   : > { %v443_v32 = vpop.permute.xlu1 %442 }
 0x30c   : > { %v445_v33 = vmul.f32 %v443_v32, %v439_v31 }
 0x311   : > { %v526_v29 = vld [vmem:[#allocation3] sm:$0xff] }
 0x312   : > { %834 = vrcp.f32 %v526_v29 }
 0x31c   : > { %v835_v30 = vpop.eup %834 }
 0x31d   : > { %531 = vperm.xlu1 %829, %v835_v30  }
 0x34c   : > { %v516_v34 = vpop.f32.mrb[0].mxu1 }
 0x34d   : > { %v520_v35 = vadd.f32 %v516_v34, %v445_v33  ;;  %v735_v36 = vpop.f32.mrb[1].mxu1 }
 0x34f   : > { %521 = vst.msk [vmem:[#allocation4] sm:$0xff] %vm315_vm0, %v520_v35 }
 0x356   : > { %v528_v37 = vld [vmem:[#allocation4] sm:$0xff] }
 0x39c   : > { %v532_v38 = vpop.permute.xlu1 %531 }
 0x39d   : > { %v534_v39 = vmul.f32 %v532_v38, %v528_v37 }
 0x39f   : > { %536 = vst.msk [vmem:[%s307_s26] sm:$0xff] %vm315_vm0, %v534_v39 }
 0x3a0   : > { %939 = shalt.err (!%p936_p13)
}
 0x3a1   : > { %s940_s21 = scalar_lea.hbm %s1301_s1, 128  ;;  %s944_s24 = scalar_lea.hbm %s1359_s3, 1024 }
 0x3a2   : > { %p941_p12 = scmp.ne.s32.totalorder %s1301_s1, %s940_s21  ;;  %p945_p7 = scmp.lt.u32.totalorder %s1301_s1, %s1359_s3 }
 0x3a3   : > { %p946_p3 = scmp.lt.u32.totalorder %s944_s24, %s940_s21  ;;  %p948_p4 = scmp.lt.u32.totalorder %s940_s21, %s1301_s1 }
 0x3a4   : > { %p942_p6 = pnand %p941_p12, %p1390_p10 }
 0x3a5   : > { %p947_p0 = por %p946_p3, %p945_p7 }
 0x3a6   : > { %p943_p5 = pneg %p942_p6 }
 0x3a7   : > { %p949_p1 = por %p948_p4, %p947_p0 }
 0x3a9   : > { %p950_p2 = pnand %p949_p1, %p943_p5 }
 0x3ab   : > { %953 = shalt.err (!%p950_p2)
}
 0x3ac   : > { %742 = dma.vmem_to_hbm [thread:$0]  (%p1390_p10), %s1303_s9, 128, %s1301_s1, %s538_s16  }
 0x3ad PF: > { %s1391_s10 = sld [smem:[#allocation19_spill]]  ;;  %p759_p8 = scmp.ge.s32.totalorder %s1028_s19, 2 }
 0x3ae   : > { %s566_s8 = sand.u32 1, %s1000_s12  }
 0x3af   : > { %s567_s23 = scalar_lea.sflag [#allocation7], %s566_s8 }
 0x3b3   : > { %p1392_p9 = scmp.ne.s32.totalorder %s1391_s10, 0 }
 0x3b5   : > { %p755_p11 = pnand %p759_p8, %p1392_p9 }
 0x3b7   : > { %995 = dma.done.wait (!%p755_p11), %s567_s23, 128  }
 0x3b8   : > { %997 = vsyncadd (!%p755_p11), %s567_s23, 4294967168  ;;  %s22_s19 = sadd.s32 1, %s1028_s19   ;;  %s1393_s28 = sld [smem:[#allocation20_spill]] }
 0x3b9   : > { %p19_p13 = scmp.ge.s32.totalorder %s22_s19, 10   ;;  %s1394_s15 = sld [smem:[#allocation15_spill]] }
 0x3ba   : > { %s1395_s16 = sld [smem:[#allocation16_spill]]  ;;  %s1396_s17 = sld [smem:[#allocation17_spill]] }
 0x3bb   : > { %s1397_s18 = sld [smem:[#allocation18_spill]]  ;;  %s1398_s12 = smov %s1004_s13 }
 0x3bc   : > { %s1399_s13 = smov %s1008_s14  ;;  %21 = sbr.rel (!%p19_p13) target bundleno = 11 (0xb), region = 113 }
 0x3be   : > { %s1400_s14 = smov %s1393_s28 }
 0x3c3   :  { %572 = vsyncpa [#allocation6], 1 }
 0x3c4   :  { %574 = vsyncpa [#allocation6 + $0x1], 1 }
 0x3c5   :  { %575 = vsyncpa [#allocation9], 1 }
 0x3c6   :  { %577 = vsyncpa [#allocation9 + $0x1], 1 }
 0x3c7   :  { %578 = vsyncpa [#allocation7], 1 }
 0x3c8   :  { %580 = vsyncpa [#allocation7 + $0x1], 1 }

</bundles_post_ra>
